<compile_context>
chip_gen: v7x
topology: tpu7x:2x2x1
jax: 0.10.0
libtpu: 0.0.40
codegen_flags: <defaults>
</compile_context>

<pallas_src>
import jax
import jax.numpy as jnp
from jax.experimental import pallas as pl
from jax.experimental.pallas import tpu as pltpu


# ----------------------------------------------------------------------------
# Fused kernel: GraphFilter+ReLU -> PoolCliqueToLine -> GraphFilter+ReLU ->
#               per-node MLP readout.  One grid step per batch tile (tb elems).
# Layouts inside the kernel: activations are (features, tb*nodes).
# ----------------------------------------------------------------------------
def fused_gnn_kernel(x_ref, s0_ref, h1_ref, b1_ref, btbd_ref, s1_ref, h2_ref,
                     b2_ref, w0_ref, c0_ref, w1_ref, c1_ref, y_ref):
    F0 = x_ref.shape[1]
    F1 = h1_ref.shape[0]
    K1 = h1_ref.shape[1] // F0
    K2 = h2_ref.shape[1] // F1

    # ---- graph filter + bias + ReLU, Krylov-stacked single matmul
    def graph_filter_relu(z0, s_bd, hcat, bias, k_taps):
        zs = [z0]
        z = z0
        for _ in range(k_taps - 1):                  # static unroll (K-1 taps)
            z = jnp.dot(z, s_bd, preferred_element_type=jnp.float32)  # x @ S^k
            zs.append(z)
        zcat = zs[0] if k_taps == 1 else jnp.concatenate(zs, axis=0)  # (K*Fin, L)
        acc = jnp.dot(hcat, zcat, preferred_element_type=jnp.float32) + bias
        return jnp.maximum(acc, 0.0)

    # ---- input tile already lane-stacked by the wrapper: (F0, tb*N0)
    xl = x_ref[0]

    a1 = graph_filter_relu(xl, s0_ref[...], h1_ref[...], b1_ref[...], K1)
    # a1: (F1, tb*N0), non-negative (post ReLU)

    # ---- PoolCliqueToLine, vectorised over the whole tile with a
    #      block-diagonal Bt: v[f,bm] = max_{bn} a1[f,bn] * Btbd[bm,bn].
    #      Off-block entries of Btbd are 0; since a1 >= 0 (ReLU precedes the
    #      pool in this module) the extra zero products never change the max,
    #      so this equals torch.max(x[..., None] * Bt, dim=2) exactly.
    btbd = btbd_ref[...]                             # (tb*M1, tb*N0)
    prod = a1[:, None, :] * btbd[None, :, :]         # (F1, tb*M1, tb*N0)
    v = jnp.max(prod, axis=-1)                       # (F1, tb*M1)

    # ---- second graph filter + ReLU on the line graph
    a2 = graph_filter_relu(v, s1_ref[...], h2_ref[...], b2_ref[...], K2)
    # a2: (F2, tb*M1)

    # ---- per-node readout MLP in (feature, lane) orientation
    h = jnp.dot(w0_ref[...], a2, preferred_element_type=jnp.float32) + c0_ref[...]
    h = jnp.maximum(h, 0.0)                          # (D0, tb*M1)
    y = jnp.dot(w1_ref[...], h, preferred_element_type=jnp.float32) + c1_ref[...]
    y_ref[0] = y.astype(y_ref.dtype)                 # (D1, tb*M1)


# ----------------------------------------------------------------------------
# Wrapper: one-time host-side parameter plumbing + single pallas_call.
# ----------------------------------------------------------------------------
def local_gnn_clique_line_forward(x, S0, H1, b1, Bt, S1, H2, b2,
                                  W0, c0, W1, c1, *, batch_tiles=None):
    B, F0, N0 = x.shape
    K1, F1, _ = H1.shape
    K2, F2, _ = H2.shape
    M1 = Bt.shape[0]
    D0 = W0.shape[1]
    D1 = W1.shape[1]

    # Pack as many batch elements per grid step as keeps the block-diagonal GSO
    # small (tb*N0 <= 256 lanes).  Fewer, fatter steps -> higher lane density
    # and less per-step overhead; remaining steps are marked "parallel" so
    # multi-TC chips can still split them.
    if batch_tiles is None:
        tb_cap = max(1, 256 // max(N0, 1))
        tb = 1
        for d in range(1, min(B, tb_cap) + 1):       # largest divisor of B <= cap
            if B % d == 0:
                tb = d
        batch_tiles = B // tb
    else:
        assert B % batch_tiles == 0
        tb = B // batch_tiles

    f32 = jnp.float32
    # Lane-stacked input tiles: (batch_tiles, F0, tb*N0)  (cheap one-time XLA op)
    x_tiles = (x.astype(f32)
               .reshape(batch_tiles, tb, F0, N0)
               .transpose(0, 2, 1, 3)
               .reshape(batch_tiles, F0, tb * N0))

    # Krylov-stacked filter banks: Hcat[f, k*G+g] = H[k, f, g]
    h1cat = jnp.transpose(H1, (1, 0, 2)).reshape(F1, K1 * F0).astype(f32)
    h2cat = jnp.transpose(H2, (1, 0, 2)).reshape(F2, K2 * F1).astype(f32)
    # Block-diagonal GSOs / incidence apply per batch element of the lane tile.
    eye_tb = jnp.eye(tb, dtype=f32)
    s0bd = jnp.kron(eye_tb, S0.astype(f32))          # (tb*N0, tb*N0)
    s1bd = jnp.kron(eye_tb, S1.astype(f32))          # (tb*M1, tb*M1)
    btbd = jnp.kron(eye_tb, Bt.astype(f32))          # (tb*M1, tb*N0)
    # Readout weights in (out_features, in_features) / column-bias orientation.
    w0t = W0.T.astype(f32)                           # (D0, F2)
    w1t = W1.T.astype(f32)                           # (D1, D0)
    c0c = c0.reshape(D0, 1).astype(f32)
    c1c = c1.reshape(D1, 1).astype(f32)
    b1c = b1.reshape(F1, 1).astype(f32)
    b2c = b2.reshape(F2, 1).astype(f32)

    out = pl.pallas_call(
        fused_gnn_kernel,
        out_shape=jax.ShapeDtypeStruct((batch_tiles, D1, tb * M1), jnp.float32),
        grid=(batch_tiles,),
        in_specs=[
            pl.BlockSpec((1, F0, tb * N0), lambda i: (i, 0, 0)),      # x tile
            pl.BlockSpec((tb * N0, tb * N0), lambda i: (0, 0)),       # S0 blkdiag
            pl.BlockSpec((F1, K1 * F0), lambda i: (0, 0)),            # H1cat
            pl.BlockSpec((F1, 1), lambda i: (0, 0)),                  # bias1
            pl.BlockSpec((tb * M1, tb * N0), lambda i: (0, 0)),       # Bt blkdiag
            pl.BlockSpec((tb * M1, tb * M1), lambda i: (0, 0)),       # S1 blkdiag
            pl.BlockSpec((F2, K2 * F1), lambda i: (0, 0)),            # H2cat
            pl.BlockSpec((F2, 1), lambda i: (0, 0)),                  # bias2
            pl.BlockSpec((D0, F2), lambda i: (0, 0)),                 # W0^T
            pl.BlockSpec((D0, 1), lambda i: (0, 0)),                  # c0
            pl.BlockSpec((D1, D0), lambda i: (0, 0)),                 # W1^T
            pl.BlockSpec((D1, 1), lambda i: (0, 0)),                  # c1
        ],
        out_specs=pl.BlockSpec((1, D1, tb * M1), lambda i: (i, 0, 0)),
        compiler_params=pltpu.CompilerParams(
            dimension_semantics=("parallel",)),
    )(x_tiles, s0bd, h1cat, b1c, btbd, s1bd, h2cat, b2c, w0t, c0c, w1t, c1c)

    # (tiles, D1, tb*M1) -> (B, M1, D1)   (cheap one-time layout plumbing)
    y = out.reshape(batch_tiles, D1, tb, M1)
    y = jnp.transpose(y, (0, 2, 3, 1)).reshape(B, M1, D1)
    return y
    # TODO(synk): targets-based output selection (self.targets) omitted because
    # targets=None in this instantiation.


# ----------------------------------------------------------------------------
# Pure-JAX reference (for correctness check)
# ----------------------------------------------------------------------------
def ref_graph_filter_relu(x, S, H, bias):
    K = H.shape[0]
    z = x
    acc = jnp.einsum('fg,bgn->bfn', H[0], z)
    for k in range(1, K):
        z = jnp.einsum('bgn,nm->bgm', z, S)
        acc = acc + jnp.einsum('fg,bgn->bfn', H[k], z)
    return jnp.maximum(acc + bias[None], 0.0)


def ref_forward(x, S0, H1, b1, Bt0, S1, H2, b2, W0, c0, W1, c1):
    h = ref_graph_filter_relu(x, S0, H1, b1)
    h = jnp.max(h[:, :, None, :] * Bt0[None, None, :, :], axis=-1)
    h = ref_graph_filter_relu(h, S1, H2, b2)
    hT = jnp.transpose(h, (0, 2, 1))
    hT = jnp.maximum(hT @ W0 + c0, 0.0)
    return hT @ W1 + c1


if __name__ == "__main__":
    B = 2            # batch
    N0 = 16          # nodes of the clique-expansion graph
    M1 = 8           # nodes of the line-expansion graph (# hyperedges)
    F0, F1, F2 = 8, 16, 16      # dimSignals = [[8, 16], [16, 16]]
    K1, K2 = 3, 3               # nFilterTaps = [[3], [3]]
    D0, D1 = 16, 4              # dimReadout = [16, 4]

    key = jax.random.PRNGKey(0)
    keys = jax.random.split(key, 12)

    # Input: batch x features x nodes
    x = jax.random.normal(keys[0], (B, F0, N0), jnp.float32)

    # GSO 0 (clique graph), symmetric, E=1
    A0 = jax.random.normal(keys[1], (N0, N0), jnp.float32)
    S0 = (A0 + A0.T) / (2.0 * N0)

    # Incidence matrix (N0 x M1), binary, deterministic pattern
    rows = jnp.arange(N0)[:, None]
    cols = jnp.arange(M1)[None, :]
    B0 = ((rows // 2 == cols) | (rows == (2 * cols + 2) % N0)).astype(jnp.float32)
    Bt0 = B0.T                                       # (M1, N0)

    # GSO 1 (line graph), symmetric
    A1 = jax.random.normal(keys[2], (M1, M1), jnp.float32)
    S1 = (A1 + A1.T) / (2.0 * M1)

    # GraphFilter 0 params: torch weight (F_out, E=1, K, F_in) -> (K, F_out, F_in)
    s1 = 1.0 / (F0 * K1) ** 0.5
    H1 = s1 * jax.random.normal(keys[3], (K1, F1, F0), jnp.float32)
    b1 = s1 * jax.random.normal(keys[4], (F1, 1), jnp.float32)
    # GraphFilter 1 params
    s2 = 1.0 / (F1 * K2) ** 0.5
    H2 = s2 * jax.random.normal(keys[5], (K2, F2, F1), jnp.float32)
    b2 = s2 * jax.random.normal(keys[6], (F2, 1), jnp.float32)
    # Readout params (stored as (in, out) == torch Linear weight transposed)
    W0 = (1.0 / F2 ** 0.5) * jax.random.normal(keys[7], (F2, D0), jnp.float32)
    c0 = (1.0 / F2 ** 0.5) * jax.random.normal(keys[8], (1, D0), jnp.float32)
    W1 = (1.0 / D0 ** 0.5) * jax.random.normal(keys[9], (D0, D1), jnp.float32)
    c1 = (1.0 / D0 ** 0.5) * jax.random.normal(keys[10], (1, D1), jnp.float32)

    y = local_gnn_clique_line_forward(x, S0, H1, b1, Bt0, S1, H2, b2,
                                      W0, c0, W1, c1)
    y = jax.block_until_ready(y)

    y_ref = ref_forward(x, S0, H1, b1, Bt0, S1, H2, b2, W0, c0, W1, c1)
    assert y.shape == (B, M1, D1), y.shape
    assert jnp.allclose(y, y_ref, atol=1e-4, rtol=1e-4), \
        float(jnp.max(jnp.abs(y - y_ref)))
    print("KERNEL_OK")
</pallas_src>

<mosaic_0001>
module attributes {stable_mosaic.version = 11 : i64} {
  func.func @fused_gnn_kernel(%arg0: i32, %arg1: memref<1x8x32xf32, #tpu.memory_space<vmem>>, %arg2: memref<32x32xf32, #tpu.memory_space<vmem>>, %arg3: memref<16x24xf32, #tpu.memory_space<vmem>>, %arg4: memref<16x1xf32, #tpu.memory_space<vmem>>, %arg5: memref<16x32xf32, #tpu.memory_space<vmem>>, %arg6: memref<16x16xf32, #tpu.memory_space<vmem>>, %arg7: memref<16x48xf32, #tpu.memory_space<vmem>>, %arg8: memref<16x1xf32, #tpu.memory_space<vmem>>, %arg9: memref<16x16xf32, #tpu.memory_space<vmem>>, %arg10: memref<16x1xf32, #tpu.memory_space<vmem>>, %arg11: memref<4x16xf32, #tpu.memory_space<vmem>>, %arg12: memref<4x1xf32, #tpu.memory_space<vmem>>, %arg13: memref<1x4x16xf32, #tpu.memory_space<vmem>>) attributes {dimension_semantics = [#tpu.dimension_semantics<parallel>], iteration_bounds = array<i64: 1>, scalar_prefetch = 0 : i64, scratch_operands = 0 : i64, tpu.core_type = #tpu.core_type<tc>, window_params = [{transform_indices = @transform_0, window_bounds = array<i64: 1, 8, 32>}, {pipeline_mode = #tpu.pipeline_mode<synchronous>, transform_indices = @transform_1, window_bounds = array<i64: 32, 32>}, {pipeline_mode = #tpu.pipeline_mode<synchronous>, transform_indices = @transform_2, window_bounds = array<i64: 16, 24>}, {pipeline_mode = #tpu.pipeline_mode<synchronous>, transform_indices = @transform_3, window_bounds = array<i64: 16, 1>}, {pipeline_mode = #tpu.pipeline_mode<synchronous>, transform_indices = @transform_4, window_bounds = array<i64: 16, 32>}, {pipeline_mode = #tpu.pipeline_mode<synchronous>, transform_indices = @transform_5, window_bounds = array<i64: 16, 16>}, {pipeline_mode = #tpu.pipeline_mode<synchronous>, transform_indices = @transform_6, window_bounds = array<i64: 16, 48>}, {pipeline_mode = #tpu.pipeline_mode<synchronous>, transform_indices = @transform_7, window_bounds = array<i64: 16, 1>}, {pipeline_mode = #tpu.pipeline_mode<synchronous>, transform_indices = @transform_8, window_bounds = array<i64: 16, 16>}, {pipeline_mode = #tpu.pipeline_mode<synchronous>, transform_indices = @transform_9, window_bounds = array<i64: 16, 1>}, {pipeline_mode = #tpu.pipeline_mode<synchronous>, transform_indices = @transform_10, window_bounds = array<i64: 4, 16>}, {pipeline_mode = #tpu.pipeline_mode<synchronous>, transform_indices = @transform_11, window_bounds = array<i64: 4, 1>}, {transform_indices = @transform_12, window_bounds = array<i64: 1, 4, 16>}]} {
    %c0 = arith.constant 0 : index
    %c0_0 = arith.constant 0 : index
    %c0_1 = arith.constant 0 : index
    %0 = vector.load %arg1[%c0, %c0_0, %c0_1] : memref<1x8x32xf32, #tpu.memory_space<vmem>>, vector<1x8x32xf32>
    %1 = vector.shape_cast %0 : vector<1x8x32xf32> to vector<8x32xf32>
    %c0_2 = arith.constant 0 : index
    %c0_3 = arith.constant 0 : index
    %2 = vector.load %arg2[%c0_2, %c0_3] : memref<32x32xf32, #tpu.memory_space<vmem>>, vector<32x32xf32>
    %c0_4 = arith.constant 0 : index
    %c0_5 = arith.constant 0 : index
    %3 = vector.load %arg3[%c0_4, %c0_5] : memref<16x24xf32, #tpu.memory_space<vmem>>, vector<16x24xf32>
    %c0_6 = arith.constant 0 : index
    %c0_7 = arith.constant 0 : index
    %4 = vector.load %arg4[%c0_6, %c0_7] : memref<16x1xf32, #tpu.memory_space<vmem>>, vector<16x1xf32>
    %cst = arith.constant dense<0.000000e+00> : vector<8x32xf32>
    %5 = tpu.matmul %1, %2, %cst {dimension_numbers = #tpu.dot_dimension_numbers<[1], [0], [0], [1], [0, 0, 1, 1], [], []>} : vector<8x32xf32>, vector<32x32xf32>, vector<8x32xf32> -> vector<8x32xf32>
    %cst_8 = arith.constant dense<0.000000e+00> : vector<8x32xf32>
    %6 = tpu.matmul %5, %2, %cst_8 {dimension_numbers = #tpu.dot_dimension_numbers<[1], [0], [0], [1], [0, 0, 1, 1], [], []>} : vector<8x32xf32>, vector<32x32xf32>, vector<8x32xf32> -> vector<8x32xf32>
    %7 = tpu.concatenate %1, %5, %6 in 0 : vector<8x32xf32>, vector<8x32xf32>, vector<8x32xf32> -> vector<24x32xf32>
    %cst_9 = arith.constant dense<0.000000e+00> : vector<16x32xf32>
    %8 = tpu.matmul %3, %7, %cst_9 {dimension_numbers = #tpu.dot_dimension_numbers<[1], [0], [0], [1], [0, 0, 1, 1], [], []>} : vector<16x24xf32>, vector<24x32xf32>, vector<16x32xf32> -> vector<16x32xf32>
    %9 = vector.broadcast %4 : vector<16x1xf32> to vector<16x32xf32>
    %10 = arith.addf %8, %9 : vector<16x32xf32>
    %cst_10 = arith.constant 0.000000e+00 : f32
    %11 = vector.broadcast %cst_10 : f32 to vector<16x32xf32>
    %12 = arith.maximumf %10, %11 : vector<16x32xf32>
    %c0_11 = arith.constant 0 : index
    %c0_12 = arith.constant 0 : index
    %13 = vector.load %arg5[%c0_11, %c0_12] : memref<16x32xf32, #tpu.memory_space<vmem>>, vector<16x32xf32>
    %14 = vector.shape_cast %12 : vector<16x32xf32> to vector<16x1x32xf32>
    %15 = vector.shape_cast %13 : vector<16x32xf32> to vector<1x16x32xf32>
    %16 = vector.broadcast %14 : vector<16x1x32xf32> to vector<16x16x32xf32>
    %17 = vector.broadcast %15 : vector<1x16x32xf32> to vector<16x16x32xf32>
    %18 = arith.mulf %16, %17 : vector<16x16x32xf32>
    %cst_13 = arith.constant dense<0xFF800000> : vector<16x16xf32>
    %19 = vector.multi_reduction <maximumf>, %18, %cst_13 [2] : vector<16x16x32xf32> to vector<16x16xf32>
    %c0_14 = arith.constant 0 : index
    %c0_15 = arith.constant 0 : index
    %20 = vector.load %arg6[%c0_14, %c0_15] : memref<16x16xf32, #tpu.memory_space<vmem>>, vector<16x16xf32>
    %c0_16 = arith.constant 0 : index
    %c0_17 = arith.constant 0 : index
    %21 = vector.load %arg7[%c0_16, %c0_17] : memref<16x48xf32, #tpu.memory_space<vmem>>, vector<16x48xf32>
    %c0_18 = arith.constant 0 : index
    %c0_19 = arith.constant 0 : index
    %22 = vector.load %arg8[%c0_18, %c0_19] : memref<16x1xf32, #tpu.memory_space<vmem>>, vector<16x1xf32>
    %cst_20 = arith.constant dense<0.000000e+00> : vector<16x16xf32>
    %23 = tpu.matmul %19, %20, %cst_20 {dimension_numbers = #tpu.dot_dimension_numbers<[1], [0], [0], [1], [0, 0, 1, 1], [], []>} : vector<16x16xf32>, vector<16x16xf32>, vector<16x16xf32> -> vector<16x16xf32>
    %cst_21 = arith.constant dense<0.000000e+00> : vector<16x16xf32>
    %24 = tpu.matmul %23, %20, %cst_21 {dimension_numbers = #tpu.dot_dimension_numbers<[1], [0], [0], [1], [0, 0, 1, 1], [], []>} : vector<16x16xf32>, vector<16x16xf32>, vector<16x16xf32> -> vector<16x16xf32>
    %25 = tpu.concatenate %19, %23, %24 in 0 : vector<16x16xf32>, vector<16x16xf32>, vector<16x16xf32> -> vector<48x16xf32>
    %cst_22 = arith.constant dense<0.000000e+00> : vector<16x16xf32>
    %26 = tpu.matmul %21, %25, %cst_22 {dimension_numbers = #tpu.dot_dimension_numbers<[1], [0], [0], [1], [0, 0, 1, 1], [], []>} : vector<16x48xf32>, vector<48x16xf32>, vector<16x16xf32> -> vector<16x16xf32>
    %27 = vector.broadcast %22 : vector<16x1xf32> to vector<16x16xf32>
    %28 = arith.addf %26, %27 : vector<16x16xf32>
    %cst_23 = arith.constant 0.000000e+00 : f32
    %29 = vector.broadcast %cst_23 : f32 to vector<16x16xf32>
    %30 = arith.maximumf %28, %29 : vector<16x16xf32>
    %c0_24 = arith.constant 0 : index
    %c0_25 = arith.constant 0 : index
    %31 = vector.load %arg9[%c0_24, %c0_25] : memref<16x16xf32, #tpu.memory_space<vmem>>, vector<16x16xf32>
    %cst_26 = arith.constant dense<0.000000e+00> : vector<16x16xf32>
    %32 = tpu.matmul %31, %30, %cst_26 {dimension_numbers = #tpu.dot_dimension_numbers<[1], [0], [0], [1], [0, 0, 1, 1], [], []>} : vector<16x16xf32>, vector<16x16xf32>, vector<16x16xf32> -> vector<16x16xf32>
    %c0_27 = arith.constant 0 : index
    %c0_28 = arith.constant 0 : index
    %33 = vector.load %arg10[%c0_27, %c0_28] : memref<16x1xf32, #tpu.memory_space<vmem>>, vector<16x1xf32>
    %34 = vector.broadcast %33 : vector<16x1xf32> to vector<16x16xf32>
    %35 = arith.addf %32, %34 : vector<16x16xf32>
    %cst_29 = arith.constant 0.000000e+00 : f32
    %36 = vector.broadcast %cst_29 : f32 to vector<16x16xf32>
    %37 = arith.maximumf %35, %36 : vector<16x16xf32>
    %c0_30 = arith.constant 0 : index
    %c0_31 = arith.constant 0 : index
    %38 = vector.load %arg11[%c0_30, %c0_31] : memref<4x16xf32, #tpu.memory_space<vmem>>, vector<4x16xf32>
    %cst_32 = arith.constant dense<0.000000e+00> : vector<4x16xf32>
    %39 = tpu.matmul %38, %37, %cst_32 {dimension_numbers = #tpu.dot_dimension_numbers<[1], [0], [0], [1], [0, 0, 1, 1], [], []>} : vector<4x16xf32>, vector<16x16xf32>, vector<4x16xf32> -> vector<4x16xf32>
    %c0_33 = arith.constant 0 : index
    %c0_34 = arith.constant 0 : index
    %40 = vector.load %arg12[%c0_33, %c0_34] : memref<4x1xf32, #tpu.memory_space<vmem>>, vector<4x1xf32>
    %41 = vector.broadcast %40 : vector<4x1xf32> to vector<4x16xf32>
    %42 = arith.addf %39, %41 : vector<4x16xf32>
    %c0_35 = arith.constant 0 : index
    %c0_36 = arith.constant 0 : index
    %c0_37 = arith.constant 0 : index
    %43 = vector.load %arg13[%c0_35, %c0_36, %c0_37] : memref<1x4x16xf32, #tpu.memory_space<vmem>>, vector<1x4x16xf32>
    %44 = vector.shape_cast %43 : vector<1x4x16xf32> to vector<4x16xf32>
    %45 = vector.shape_cast %42 : vector<4x16xf32> to vector<1x4x16xf32>
    tpu.vector_store %arg13[%c0_35, %c0_36, %c0_37], %45 {strides = array<i32>} : memref<1x4x16xf32, #tpu.memory_space<vmem>>, vector<1x4x16xf32>,
    return
  }
  func.func @transform_0(%arg0: i32) -> (i32, i32, i32) {
    %c0_i32 = arith.constant 0 : i32
    %c0_i32_0 = arith.constant 0 : i32
    %c0_i32_1 = arith.constant 0 : i32
    return %arg0, %c0_i32, %c0_i32_0 : i32, i32, i32
  }
  func.func @transform_1(%arg0: i32) -> (i32, i32) {
    %c0_i32 = arith.constant 0 : i32
    %c0_i32_0 = arith.constant 0 : i32
    %c0_i32_1 = arith.constant 0 : i32
    return %c0_i32, %c0_i32_0 : i32, i32
  }
  func.func @transform_2(%arg0: i32) -> (i32, i32) {
    %c0_i32 = arith.constant 0 : i32
    %c0_i32_0 = arith.constant 0 : i32
    %c0_i32_1 = arith.constant 0 : i32
    return %c0_i32, %c0_i32_0 : i32, i32
  }
  func.func @transform_3(%arg0: i32) -> (i32, i32) {
    %c0_i32 = arith.constant 0 : i32
    %c0_i32_0 = arith.constant 0 : i32
    %c0_i32_1 = arith.constant 0 : i32
    return %c0_i32, %c0_i32_0 : i32, i32
  }
  func.func @transform_4(%arg0: i32) -> (i32, i32) {
    %c0_i32 = arith.constant 0 : i32
    %c0_i32_0 = arith.constant 0 : i32
    %c0_i32_1 = arith.constant 0 : i32
    return %c0_i32, %c0_i32_0 : i32, i32
  }
  func.func @transform_5(%arg0: i32) -> (i32, i32) {
    %c0_i32 = arith.constant 0 : i32
    %c0_i32_0 = arith.constant 0 : i32
    %c0_i32_1 = arith.constant 0 : i32
    return %c0_i32, %c0_i32_0 : i32, i32
  }
  func.func @transform_6(%arg0: i32) -> (i32, i32) {
    %c0_i32 = arith.constant 0 : i32
    %c0_i32_0 = arith.constant 0 : i32
    %c0_i32_1 = arith.constant 0 : i32
    return %c0_i32, %c0_i32_0 : i32, i32
  }
  func.func @transform_7(%arg0: i32) -> (i32, i32) {
    %c0_i32 = arith.constant 0 : i32
    %c0_i32_0 = arith.constant 0 : i32
    %c0_i32_1 = arith.constant 0 : i32
    return %c0_i32, %c0_i32_0 : i32, i32
  }
  func.func @transform_8(%arg0: i32) -> (i32, i32) {
    %c0_i32 = arith.constant 0 : i32
    %c0_i32_0 = arith.constant 0 : i32
    %c0_i32_1 = arith.constant 0 : i32
    return %c0_i32, %c0_i32_0 : i32, i32
  }
  func.func @transform_9(%arg0: i32) -> (i32, i32) {
    %c0_i32 = arith.constant 0 : i32
    %c0_i32_0 = arith.constant 0 : i32
    %c0_i32_1 = arith.constant 0 : i32
    return %c0_i32, %c0_i32_0 : i32, i32
  }
  func.func @transform_10(%arg0: i32) -> (i32, i32) {
    %c0_i32 = arith.constant 0 : i32
    %c0_i32_0 = arith.constant 0 : i32
    %c0_i32_1 = arith.constant 0 : i32
    return %c0_i32, %c0_i32_0 : i32, i32
  }
  func.func @transform_11(%arg0: i32) -> (i32, i32) {
    %c0_i32 = arith.constant 0 : i32
    %c0_i32_0 = arith.constant 0 : i32
    %c0_i32_1 = arith.constant 0 : i32
    return %c0_i32, %c0_i32_0 : i32, i32
  }
  func.func @transform_12(%arg0: i32) -> (i32, i32, i32) {
    %c0_i32 = arith.constant 0 : i32
    %c0_i32_0 = arith.constant 0 : i32
    %c0_i32_1 = arith.constant 0 : i32
    return %arg0, %c0_i32, %c0_i32_0 : i32, i32, i32
  }
}

</mosaic_0001>

<bundles_post_ra>
// kernel: tpu_custom_call.1
= control target key start
LH: loop header
LB: loop body
LE: loop exit
PB: predicated region body
PF: predicated region fallthrough
CT: control target
= control target key end

     0   :  { %17 = vsyncpa [#allocation3], 0  ;;  %s1970_s0 = inlined_call_operand.hbm [shape: f32[1,8,32], index: 0, kind: input, shape index: {}]   ;;  %s1971_s1 = inlined_call_operand.vmem [shape: f32[32,32], index: 1, kind: input, shape index: {}]   ;;  %s1972_s2 = inlined_call_operand.vmem [shape: f32[16,24], index: 2, kind: input, shape index: {}]   ;;  %s1973_s3 = inlined_call_operand.vmem [shape: f32[16,1], index: 3, kind: input, shape index: {}]   ;;  %s1974_s4 = inlined_call_operand.vmem [shape: f32[16,32], index: 4, kind: input, shape index: {}]   ;;  %s1975_s5 = inlined_call_operand.hbm [shape: f32[16,16], index: 5, kind: input, shape index: {}]   ;;  %s1976_s6 = inlined_call_operand.hbm [shape: f32[16,48], index: 6, kind: input, shape index: {}]   ;;  %s1977_s7 = inlined_call_operand.vmem [shape: f32[16,1], index: 7, kind: input, shape index: {}]   ;;  %s1978_s8 = inlined_call_operand.vmem [shape: f32[16,16], index: 8, kind: input, shape index: {}]   ;;  %s1979_s9 = inlined_call_operand.vmem [shape: f32[16,1], index: 9, kind: input, shape index: {}]   ;;  %s1980_s10 = inlined_call_operand.vmem [shape: f32[4,16], index: 10, kind: input, shape index: {}]   ;;  %s1981_s11 = inlined_call_operand.vmem [shape: f32[4,1], index: 11, kind: input, shape index: {}]   ;;  %s1982_s12 = inlined_call_operand.hbm [shape: f32[1,4,16], index: 12, kind: output, shape index: {}]  }
   0x1   :  { %18 = vsyncpa [#allocation6], 0 }
   0x2   :  { %19 = vsyncpa [#allocation4], 0  ;;  %s1575_s21 = smov [#allocation5]   ;;  %s1481_s25 = scalar_lea.hbm %s1975_s5, 256 }
   0x3   :  { %s43_s22 = sshll.u32 %s1575_s21, 4  ;;  %p1482_p0 = scmp.ne.s32.totalorder %s1975_s5, %s1481_s25  ;;  %s44_s22 = int_to_ptr.vmem [resolvable:$true] %s43_s22 }
   0x4   :  { %p1485_p1 = scmp.lt.u32.totalorder %s1481_s25, %s1975_s5 }
   0x6   :  { %p1487_p2 = pnand %p1485_p1, %p1482_p0 }
   0x8   :  { %1490 = shalt.err (!%p1487_p2)
}
   0x9   :  { %s1491_s30 = scalar_lea.vmem %s44_s22, 256  ;;  %p1496_p4 = scmp.lt.s32.totalorder %s44_s22, %s44_s22 }
   0xa   :  { %p1492_p3 = scmp.ne.s32.totalorder %s44_s22, %s1491_s30  ;;  %p1497_p5 = scmp.lt.s32.totalorder %s1491_s30, %s1491_s30 }
   0xc   :  { %p1498_p6 = por %p1497_p5, %p1496_p4 }
   0xe   :  { %p1499_p7 = pnand %p1498_p6, %p1492_p3 }
  0x10   :  { %1502 = shalt.err (!%p1499_p7)
}
  0x11   :  { %s1576_s13 = smov 128   ;;  %s1577_s14 = smov 8  }
  0x12   :  { %49 = dma.hbm_to_vmem [thread:$0]  %s1975_s5, 256, %s44_s22, [#allocation6], %s1576_s13, %s1576_s13, %s1577_s14  }
  0x13   :  { %s1578_s17 = smov [#allocation2]   ;;  %s1579_s19 = smov [#allocation7]  }
  0x14   :  { %s26_s18 = sshll.u32 %s1578_s17, 4  ;;  %s55_s20 = sshll.u32 %s1579_s19, 4  ;;  %s27_s18 = int_to_ptr.vmem [resolvable:$true] %s26_s18  ;;  %s56_s20 = int_to_ptr.vmem [resolvable:$true] %s55_s20 }
  0x15   :  { %s1503_s24 = scalar_lea.hbm %s1970_s0, 128 }
  0x16   :  { %p1504_p8 = scmp.ne.s32.totalorder %s1970_s0, %s1503_s24  ;;  %p1507_p9 = scmp.lt.u32.totalorder %s1503_s24, %s1970_s0 }
  0x18   :  { %p1509_p10 = pnand %p1507_p9, %p1504_p8 }
  0x1a   :  { %1512 = shalt.err (!%p1509_p10)
}
  0x1b   :  { %s1513_s5 = scalar_lea.vmem %s27_s18, 128  ;;  %p1518_p12 = scmp.lt.s32.totalorder %s27_s18, %s27_s18 }
  0x1c   :  { %p1514_p11 = scmp.ne.s32.totalorder %s27_s18, %s1513_s5  ;;  %p1519_p13 = scmp.lt.s32.totalorder %s1513_s5, %s1513_s5 }
  0x1e   :  { %p1520_p0 = por %p1519_p13, %p1518_p12 }
  0x20   :  { %p1521_p1 = pnand %p1520_p0, %p1514_p11 }
  0x22   :  { %1524 = shalt.err (!%p1521_p1)
}
  0x23   :  { %29 = dma.hbm_to_vmem [thread:$0]  %s1970_s0, 128, %s27_s18, [#allocation3]  }
  0x24   :  { %s1525_s16 = scalar_lea.hbm %s1976_s6, 256 }
  0x25   :  { %p1526_p2 = scmp.ne.s32.totalorder %s1976_s6, %s1525_s16  ;;  %p1529_p3 = scmp.lt.u32.totalorder %s1525_s16, %s1976_s6 }
  0x27   :  { %p1531_p4 = pnand %p1529_p3, %p1526_p2 }
  0x29   :  { %1534 = shalt.err (!%p1531_p4)
}
  0x2a   :  { %s1535_s24 = scalar_lea.vmem %s56_s20, 256  ;;  %p1540_p6 = scmp.lt.s32.totalorder %s56_s20, %s56_s20 }
  0x2b   :  { %p1536_p5 = scmp.ne.s32.totalorder %s56_s20, %s1535_s24  ;;  %p1541_p7 = scmp.lt.s32.totalorder %s1535_s24, %s1535_s24 }
  0x2d   :  { %p1542_p8 = por %p1541_p7, %p1540_p6 }
  0x2f   :  { %p1543_p9 = pnand %p1542_p8, %p1536_p5 }
  0x31   :  { %1546 = shalt.err (!%p1543_p9)
}
  0x32   :  { %61 = dma.hbm_to_vmem [thread:$0]  %s1976_s6, 256, %s56_s20, [#allocation6], %s1576_s13, %s1576_s13, %s1577_s14  }
  0x33   :  { %1569 = dma.done.wait [#allocation3], 128  }
  0x34   :  { %1570 = vsyncadd [#allocation3], 4294967168 }
  0x35   :  { %1571 = dma.done.wait [#allocation6], 512  }
  0x36   :  { %1572 = vsyncadd [#allocation6], 4294966784  ;;  %v1580_v0 = vmov 0.0|0.0   ;;  %vm1581_vm0 = vmmov 0   ;;  %v1582_v1 = vmov 0.0   ;;  %v82_v2 = vld [vmem:[%s1971_s1] sm:$0xff]  ;;  %v339_v19 = vlaneseq }
  0x37   :  { %1425 = vmatprep.subr.bf16.mxu0 %v1580_v0  ;;  %1359 = vmatprep.mubr.msk.f32.mxu0 %vm1581_vm0, %v1582_v1  ;;  %v83_v3 = vld [vmem:[%s1971_s1 + $0x8] sm:$0xff]  ;;  %v84_v4 = vld [vmem:[%s1971_s1 + $0x10] sm:$0xff]  ;;  %v85_v6 = vld [vmem:[%s1971_s1 + $0x18] sm:$0xff]  ;;  %vm90_vm1 = vcmask 261120   ;;  %vm247_vm2 = vcmask 195584   ;;  %v1583_v14 = vmov 0  }
  0x38   :  { %1431 = vmatprep.subr.bf16.mxu1 %v1580_v0  ;;  %1370 = vmatprep.mubr.msk.f32.mxu1 %vm1581_vm0, %v1582_v1  ;;  %v1426_v5 = vpack.c.bf16 %v83_v3, %v82_v2  ;;  %v1429_v7 = vpack.c.bf16 %v85_v6, %v84_v4  ;;  %v81_v8 = vld [vmem:[#allocation2] sm:$0xff]  ;;  %v89_v15 = vld [vmem:[%s1973_s3 + $0x8] sm:$0xff]  ;;  %v340_v20 = vshrl.u32 %v339_v19, 7  ;;  %v680_v21 = vand.u32 127, %v339_v19 }
  0x39   :  { %v86_v12 = vld [vmem:[%s1972_s2] sm:$0xff]  ;;  %1479 = vset.pattern.permute.xlu0 %v1583_v14  ;;  %1480 = vset.pattern.permute.xlu1 %v1583_v14  ;;  %v87_v17 = vld [vmem:[%s1972_s2 + $0x8] sm:$0xff]  ;;  %v1584_v25 = vmov 1966171168   ;;  %vm690_vm3 = vcmask 130112   ;;  %vm827_vm4 = vcmask 1041409  }
  0x3a   :  { %1427 = vmatpush3.bf16.msra.mxu0 %v1426_v5  ;;  %1433 = vmatpush3.bf16.msra.mxu1 %v1426_v5  ;;  %v88_v13 = vld [vmem:[%s1973_s3] sm:$0xff]  ;;  %v1727_v22 = vsub.s32 %v680_v21, %v340_v20  ;;  %v685_v23 = vadd.s32 4294967288, %v680_v21  ;;  %v337_v26 = vunpack.c.l.s4 %v1584_v25  ;;  %v1731_v39 = vsub.s32 0, %v340_v20  ;;  %v1744_v52 = vld [vmem:[%s1974_s4 + $0x8] sm:$0xff] }
  0x3b   :  { %1428 = vmatprep.subr.bf16.mxu0 %v1580_v0  ;;  %1434 = vmatprep.subr.bf16.mxu1 %v1580_v0  ;;  %v1736_v45 = vld [vmem:[%s1974_s4] sm:$0xff]  ;;  %vm829_vm5 = vcmask 1042434   ;;  %vm831_vm6 = vcmask 1043459   ;;  %vm833_vm7 = vcmask 1044484   ;;  %vm835_vm8 = vcmask 1045509  }
  0x3c   :  { %239 = vperm.xlu0 %1479, %v88_v13   ;;  %v1729_v24 = vsub.s32 %v685_v23, %v340_v20  ;;  %v338_v28 = vunpack.c.0.s8 %v337_v26  ;;  %vm837_vm9 = vcmask 1046534   ;;  %vm839_vm10 = vcmask 1047559  }
  0x3d   :  { %vm848_vm11 = vcmask 130048   ;;  %vm1021_vm12 = vcmask 392192   ;;  %vm1282_vm13 = vcmask 125952  }
  0x3e   :  { %1430 = vmatpush3.bf16.msra.mxu0 %v1429_v7  ;;  %1436 = vmatpush3.bf16.msra.mxu1 %v1429_v7  ;;  %v341_v32 = vsub.s32 %v338_v28, %v340_v20 }
  0x40   :  { %244 = vperm.xlu0 %1479, %v89_v15  }
  0x41   :  { %1360 = vmatmul.mubr.msk.f32.vlgmr.msra.gmra.mrb[0].mxu0 %vm90_vm1, %v81_v8 }
  0x42   :  { %1379 = vmatprep.mubr.msk.f32.mxu0 %vm247_vm2, %v86_v12 }
  0xbb   :  { %v240_v27 = vpop.permute.xlu0 %239 }
  0xbf   :  { %v245_v29 = vpop.permute.xlu0 %244 }
 0x114   :  { %v160_v9 = vpop.f32.mrb[0].mxu0 }
 0x115   :  { %v1437_v10 = vpack.c.bf16 %v160_v9, %v81_v8  ;;  %v1361_v11 = vpop.f32.mrb[1].mxu0  ;;  %1371 = vmatmul.mubr.msk.f32.vlgmr.msra.gmra.mrb[0].mxu1 %vm90_vm1, %v160_v9 }
 0x117   :  { %1438 = vmatprep.subr.bf16.mxu0 %v1437_v10 }
 0x118   :  { %1440 = vmatpush3.bf16.msra.mxu0 %v1437_v10 }
 0x1e8   :  { %v233_v16 = vpop.f32.mrb[0].mxu1 }
 0x1e9   :  { %v1372_v18 = vpop.f32.mrb[1].mxu1  ;;  %1377 = vmatprep.subr.mxu0 %v233_v16 }
 0x1ea   :  { %1378 = vmatpush3.msra.mxu0 %v233_v16 }
 0x1eb   :  { %1380 = vmatmul.mubr.msk.f32.vlgmr.msra.gmra.mrb[2].mxu0 %vm247_vm2, %v87_v17 }
 0x2be   :  { %v1381_v30 = vpop.f32.mrb[2].mxu0 }
 0x2bf   :  { %v326_v31 = vadd.f32 %v1381_v30, %v245_v29  ;;  %v320_v33 = vpop.f32.mrb[3].mxu0 }
 0x2c0   :  { %v321_v34 = vadd.f32 %v320_v33, %v240_v27 }
 0x2c1   :  { %v330_v35 = vmax.f32 %v326_v31, 0.0 }
 0x2c2   :  { %v329_v36 = vmax.f32 %v321_v34, 0.0 }
 0x2c3   :  { %v384_v37 = vcombine.high %v330_v35, %v330_v35  ;;  %v391_v38 = vrot.slane %v330_v35, %v341_v32 }
 0x2c4   :  { %v335_v40 = vcombine.high %v329_v36, %v329_v36  ;;  %v342_v41 = vrot.slane %v329_v36, %v341_v32 }
 0x2c5   :  { %v398_v42 = vrot.slane %v384_v37, %v341_v32  ;;  %v407_v43 = vrot.slane %v391_v38, %v341_v32  ;;  %v399_v50 = vcombine.high %v391_v38, %v391_v38 }
 0x2c6   :  { %v350_v44 = vcombine.high %v342_v41, %v342_v41  ;;  %v1738_v46 = vrot.slane %v342_v41, %v341_v32  ;;  %v349_v51 = vrot.slane %v335_v40, %v341_v32 }
 0x2c7   :  { %v468_v47 = vrot.slane %v407_v43, %v1731_v39  ;;  %v429_v48 = vcombine.high %v407_v43, %v407_v43  ;;  %v414_v49 = vrot.slane %v398_v42, %v341_v32  ;;  %v400_v61 = vcombine.high %v398_v42, %v398_v42 }
 0x2c8   :  { %v1751_v56 = vrot.slane %v350_v44, %v341_v32  ;;  %v436_v60 = vrot.slane %v1738_v46, %v1731_v39  ;;  %v365_v62 = vrot.slane %v349_v51, %v341_v32  ;;  %v421_v4 = vrot.slane %v399_v50, %v341_v32 }
 0x2c9   :  { %v529_v53 = vmul.f32 %v468_v47, %v1736_v45  ;;  %v476_v54 = vrot.slane %v429_v48, %v1731_v39  ;;  %v1749_v55 = vrot.slane %v414_v49, %v1731_v39  ;;  %v530_v59 = vmul.f32 %v468_v47, %v1744_v52 }
 0x2ca   :  { %v1763_v3 = vrot.slane %v1751_v56, %v1731_v39  ;;  %v513_v6 = vmul.f32 %v436_v60, %v1736_v45  ;;  %v351_v7 = vcombine.high %v349_v51, %v349_v51  ;;  %v1768_v8 = vrot.slane %v365_v62, %v1731_v39 }
 0x2cb   :  { %v593_v57 = vsel %vm90_vm1, %v529_v53, -inf  ;;  %v534_v58 = vmul.f32 %v476_v54, %v1744_v52  ;;  %v538_v2 = vmul.f32 %v1749_v55, %v1744_v52  ;;  %v596_v5 = vsel %vm90_vm1, %v530_v59, -inf }
 0x2cc   :  { %594 = vmax.xlane.f32.xlu1 %v593_v57  ;;  %v515_v10 = vmul.f32 %v1763_v3, %v1736_v45  ;;  %v431_v11 = vcombine.high %v421_v4, %v421_v4  ;;  %v428_v12 = vrot.slane %v400_v61, %v341_v32  ;;  %v545_v13 = vsel %vm90_vm1, %v513_v6, -inf }
 0x2cd   :  { %v608_v63 = vsel %vm90_vm1, %v534_v58, -inf  ;;  %v620_v9 = vsel %vm90_vm1, %v538_v2, -inf  ;;  %v514_v14 = vmul.f32 %v436_v60, %v1744_v52  ;;  %v472_v15 = vrot.slane %v421_v4, %v1731_v39 }
 0x2ce   :  { %609 = vmax.xlane.f32.xlu0 %v608_v63  ;;  %v522_v16 = vmul.f32 %v1768_v8, %v1744_v52  ;;  %v379_v17 = vrot.slane %v351_v7, %v341_v32  ;;  %v551_v18 = vsel %vm90_vm1, %v515_v10, -inf  ;;  %v1780_v19 = vrot.slane %v431_v11, %v1731_v39 }
 0x2cf   :  { %v381_v20 = vcombine.high %v365_v62, %v365_v62  ;;  %v432_v21 = vcombine.high %v428_v12, %v428_v12  ;;  %v548_v25 = vsel %vm90_vm1, %v514_v14, -inf  ;;  %v531_v26 = vmul.f32 %v472_v15, %v1736_v45 }
 0x2d0   :  { %597 = vmax.xlane.f32.xlu1 %v596_v5  ;;  %v383_v23 = vcombine.high %v379_v17, %v379_v17  ;;  %v572_v27 = vsel %vm90_vm1, %v522_v16, -inf  ;;  %v430_v28 = vcombine.high %v414_v49, %v414_v49  ;;  %v456_v29 = vrot.slane %v379_v17, %v1731_v39 }
 0x2d1   :  { %v460_v30 = vrot.slane %v381_v20, %v1731_v39  ;;  %v536_v31 = vmul.f32 %v1780_v19, %v1744_v52  ;;  %v488_v32 = vrot.slane %v428_v12, %v1731_v39  ;;  %v496_v34 = vrot.slane %v432_v21, %v1731_v39 }
 0x2d2   :  { %621 = vmax.xlane.f32.xlu0 %v620_v9  ;;  %v464_v33 = vrot.slane %v383_v23, %v1731_v39  ;;  %v599_v35 = vsel %vm90_vm1, %v531_v26, -inf  ;;  %v532_v36 = vmul.f32 %v472_v15, %v1744_v52  ;;  %v492_v37 = vrot.slane %v430_v28, %v1731_v39  ;;  %v646_v23 = vld [vmem:[%s1977_s7 + $0x8] sm:$0xff] }
 0x2d3   :  { %v382_v38 = vcombine.high %v1751_v56, %v1751_v56  ;;  %v523_v40 = vmul.f32 %v456_v29, %v1736_v45  ;;  %v1799_v41 = vmul.f32 %v460_v30, %v1736_v45  ;;  %v614_v42 = vsel %vm90_vm1, %v536_v31, -inf  ;;  %v641_v28 = vld [vmem:[#allocation5] sm:$0xff] }
 0x2d4   :  { %546 = vmax.xlane.f32.xlu1 %v545_v13  ;;  %v540_v43 = vmul.f32 %v488_v32, %v1744_v52  ;;  %v1804_v44 = vmul.f32 %v464_v33, %v1736_v45  ;;  %v1807_v47 = vmul.f32 %v496_v34, %v1736_v45  ;;  %v602_v48 = vsel %vm90_vm1, %v532_v36, -inf }
 0x2d5   :  { %v533_v49 = vmul.f32 %v476_v54, %v1736_v45  ;;  %v542_v51 = vmul.f32 %v492_v37, %v1744_v52  ;;  %v448_v53 = vrot.slane %v382_v38, %v1731_v39  ;;  %v537_v57 = vmul.f32 %v1749_v55, %v1736_v45 }
 0x2d6   :  { %552 = vmax.xlane.f32.xlu0 %v551_v18  ;;  %v626_v50 = vsel %vm90_vm1, %v540_v43, -inf  ;;  %v380_v58 = vcombine.high %v1738_v46, %v1738_v46  ;;  %v516_v61 = vmul.f32 %v1763_v3, %v1744_v52  ;;  %v524_v55 = vmul.f32 %v456_v29, %v1744_v52  ;;  %v642_v29 = vld [vmem:[#allocation5 + $0x8] sm:$0xff] }
 0x2d7   :  { %v605_v56 = vsel %vm90_vm1, %v533_v49, -inf  ;;  %v632_v59 = vsel %vm90_vm1, %v542_v51, -inf  ;;  %v520_v54 = vmul.f32 %v448_v53, %v1744_v52  ;;  %v617_v60 = vsel %vm90_vm1, %v537_v57, -inf }
 0x2d8   :  { %549 = vmax.xlane.f32.xlu1 %v548_v25  ;;  %v444_v62 = vrot.slane %v380_v58, %v1731_v39  ;;  %v554_v46 = vsel %vm90_vm1, %v516_v61, -inf  ;;  %v578_v4 = vsel %vm90_vm1, %v524_v55, -inf  ;;  %v526_v5 = vmul.f32 %v460_v30, %v1744_v52 }
 0x2d9   :  { %v566_v63 = vsel %vm90_vm1, %v520_v54, -inf  ;;  %v528_v7 = vmul.f32 %v464_v33, %v1744_v52  ;;  %v521_v10 = vmul.f32 %v1768_v8, %v1736_v45  ;;  %v544_v12 = vmul.f32 %v496_v34, %v1744_v52 }
 0x2da   :  { %573 = vmax.xlane.f32.xlu0 %v572_v27  ;;  %v517_v2 = vmul.f32 %v444_v62, %v1736_v45  ;;  %v518_v39 = vmul.f32 %v444_v62, %v1744_v52  ;;  %v584_v6 = vsel %vm90_vm1, %v526_v5, -inf  ;;  %v535_v14 = vmul.f32 %v1780_v19, %v1736_v45 }
 0x2db   :  { %v590_v11 = vsel %vm90_vm1, %v528_v7, -inf  ;;  %v569_v13 = vsel %vm90_vm1, %v521_v10, -inf  ;;  %v638_v15 = vsel %vm90_vm1, %v544_v12, -inf  ;;  %v539_v17 = vmul.f32 %v488_v32, %v1736_v45 }
 0x2dc   :  { %600 = vmax.xlane.f32.xlu1 %v599_v35  ;;  %v557_v3 = vsel %vm90_vm1, %v517_v2, -inf  ;;  %v560_v9 = vsel %vm90_vm1, %v518_v39, -inf  ;;  %v611_v16 = vsel %vm90_vm1, %v535_v14, -inf  ;;  %v541_v18 = vmul.f32 %v492_v37, %v1736_v45 }
 0x2dd   :  { %v623_v8 = vsel %vm90_vm1, %v539_v17, -inf  ;;  %v519_v20 = vmul.f32 %v448_v53, %v1736_v45  ;;  %v575_v21 = vsel %vm90_vm1, %v523_v40, -inf  ;;  %v581_v25 = vsel %vm90_vm1, %v1799_v41, -inf  ;;  %v1203_v45 = vld [vmem:[%s1981_s11] sm:$0xf] }
 0x2de   :  { %615 = vmax.xlane.f32.xlu0 %v614_v42  ;;  %v629_v52 = vsel %vm90_vm1, %v541_v18, -inf  ;;  %v587_v26 = vsel %vm90_vm1, %v1804_v44, -inf  ;;  %v635_v27 = vsel %vm90_vm1, %v1807_v47, -inf  ;;  %v1864_v30 = vpack.c.bf16 %v642_v29, %v641_v28 }
 0x2df   :  { %v563_v19 = vsel %vm90_vm1, %v519_v20, -inf }
 0x2e0   :  { %603 = vmax.xlane.f32.xlu1 %v602_v48  ;;  %1442 = vmatprep.subr.bf16.mxu1 %v1864_v30 }
 0x2e1   :  { %1444 = vmatpush3.bf16.msra.mxu1 %v1864_v30 }
 0x2e2   :  { %627 = vmax.xlane.f32.xlu0 %v626_v50  ;;  %1446 = vmatprep.subr.bf16.mxu1 %v1864_v30 }
 0x2e4   :  { %606 = vmax.xlane.f32.xlu1 %v605_v56 }
 0x2e6   :  { %633 = vmax.xlane.f32.xlu0 %v632_v59 }
 0x2e8   :  { %618 = vmax.xlane.f32.xlu1 %v617_v60 }
 0x2ea   :  { %567 = vmax.xlane.f32.xlu0 %v566_v63 }
 0x2ec   :  { %555 = vmax.xlane.f32.xlu1 %v554_v46 }
 0x2ee   :  { %579 = vmax.xlane.f32.xlu0 %v578_v4 }
 0x2f0   :  { %558 = vmax.xlane.f32.xlu1 %v557_v3 }
 0x2f2   :  { %585 = vmax.xlane.f32.xlu0 %v584_v6 }
 0x2f4   :  { %561 = vmax.xlane.f32.xlu1 %v560_v9 }
 0x2f6   :  { %591 = vmax.xlane.f32.xlu0 %v590_v11 }
 0x2f8   :  { %570 = vmax.xlane.f32.xlu1 %v569_v13 }
 0x2fa   :  { %639 = vmax.xlane.f32.xlu0 %v638_v15 }
 0x2fc   :  { %612 = vmax.xlane.f32.xlu1 %v611_v16 }
 0x300   :  { %624 = vmax.xlane.f32.xlu1 %v623_v8 }
 0x304   :  { %630 = vmax.xlane.f32.xlu1 %v629_v52 }
 0x308   :  { %564 = vmax.xlane.f32.xlu1 %v563_v19 }
 0x30c   :  { %576 = vmax.xlane.f32.xlu1 %v575_v21 }
 0x310   :  { %582 = vmax.xlane.f32.xlu1 %v581_v25  ;;  %1018 = vperm.xlu0 %1479, %v646_v23  }
 0x314   :  { %1206 = vperm.xlu0 %1479, %v1203_v45   ;;  %588 = vmax.xlane.f32.xlu1 %v587_v26 }
 0x318   :  { %636 = vmax.xlane.f32.xlu1 %v635_v27 }
 0x359   :  { %v595_v31 = vpop.xlane.xlu1 %594 }
 0x35a   :  { %v758_v32 = vrot.slane %v595_v31, %v1727_v22 }
 0x35b   :  { %v610_v36 = vpop.xlane.xlu0 %609 }
 0x35c   :  { %v780_v57 = vrot.slane %v610_v36, %v1729_v24 }
 0x35d   :  { %v598_v33 = vpop.xlane.xlu1 %597 }
 0x35e   :  { %v762_v34 = vrot.slane %v598_v33, %v1729_v24 }
 0x35f   :  { %v622_v42 = vpop.xlane.xlu0 %621 }
 0x360   :  { %v763_v35 = vsel %vm690_vm3, %v762_v34, %v758_v32  ;;  %v798_v62 = vrot.slane %v622_v42, %v1729_v24 }
 0x361   :  { %v547_v37 = vpop.xlane.xlu1 %546 }
 0x362   :  { %v684_v40 = vrot.slane %v547_v37, %v1727_v22 }
 0x363   :  { %v553_v47 = vpop.xlane.xlu0 %552 }
 0x364   :  { %v695_v4 = vrot.slane %v553_v47, %v1727_v22 }
 0x365   :  { %v550_v38 = vpop.xlane.xlu1 %549 }
 0x366   :  { %v689_v41 = vrot.slane %v550_v38, %v1729_v24 }
 0x367   :  { %v574_v59 = vpop.xlane.xlu0 %573 }
 0x368   :  { %v691_v43 = vsel %vm690_vm3, %v689_v41, %v684_v40  ;;  %v726_v16 = vrot.slane %v574_v59, %v1729_v24 }
 0x369   :  { %v601_v44 = vpop.xlane.xlu1 %600 }
 0x36a   :  { %v767_v49 = vrot.slane %v601_v44, %v1727_v22 }
 0x36b   :  { %v616_v46 = vpop.xlane.xlu0 %615 }
 0x36c   :  { %v789_v52 = vrot.slane %v616_v46, %v1729_v24 }
 0x36d   :  { %v604_v48 = vpop.xlane.xlu1 %603 }
 0x36e   :  { %v771_v50 = vrot.slane %v604_v48, %v1729_v24 }
 0x36f   :  { %v628_v7 = vpop.xlane.xlu0 %627 }
 0x370   :  { %v772_v51 = vsel %vm690_vm3, %v771_v50, %v767_v49  ;;  %v807_v45 = vrot.slane %v628_v7, %v1729_v24 }
 0x371   :  { %v841_v53 = vsel %vm827_vm4, %v772_v51, %v763_v35  ;;  %v607_v56 = vpop.xlane.xlu1 %606 }
 0x372   :  { %v776_v58 = vrot.slane %v607_v56, %v1727_v22 }
 0x373   :  { %v634_v13 = vpop.xlane.xlu0 %633 }
 0x374   :  { %v781_v54 = vsel %vm690_vm3, %v780_v57, %v776_v58  ;;  %v816_v33 = vrot.slane %v634_v13, %v1729_v24 }
 0x375   :  { %v842_v60 = vsel %vm829_vm5, %v781_v54, %v841_v53  ;;  %v619_v61 = vpop.xlane.xlu1 %618 }
 0x376   :  { %v794_v63 = vrot.slane %v619_v61, %v1727_v22 }
 0x377   :  { %v568_v19 = vpop.xlane.xlu0 %567 }
 0x378   :  { %v799_v55 = vsel %vm690_vm3, %v798_v62, %v794_v63  ;;  %v717_v38 = vrot.slane %v568_v19, %v1729_v24 }
 0x379   :  { %v556_v2 = vpop.xlane.xlu1 %555 }
 0x37a   :  { %v699_v5 = vrot.slane %v556_v2, %v1729_v24 }
 0x37b   :  { %v580_v29 = vpop.xlane.xlu0 %579 }
 0x37c   :  { %v700_v3 = vsel %vm690_vm3, %v699_v5, %v695_v4  ;;  %v735_v47 = vrot.slane %v580_v29, %v1729_v24 }
 0x37d   :  { %v828_v39 = vsel %vm827_vm4, %v700_v3, %v691_v43  ;;  %v559_v6 = vpop.xlane.xlu1 %558 }
 0x37e   :  { %v704_v10 = vrot.slane %v559_v6, %v1727_v22 }
 0x37f   :  { %v586_v41 = vpop.xlane.xlu0 %585 }
 0x380   :  { %v744_v57 = vrot.slane %v586_v41, %v1729_v24 }
 0x381   :  { %v562_v9 = vpop.xlane.xlu1 %561 }
 0x382   :  { %v708_v11 = vrot.slane %v562_v9, %v1729_v24 }
 0x383   :  { %v592_v51 = vpop.xlane.xlu0 %591 }
 0x384   :  { %v709_v12 = vsel %vm690_vm3, %v708_v11, %v704_v10  ;;  %v753_v61 = vrot.slane %v592_v51, %v1729_v24  ;;  %v1108_v11 = vld [vmem:[%s1979_s9 + $0x8] sm:$0xff] }
 0x385   :  { %v830_v14 = vsel %vm829_vm5, %v709_v12, %v828_v39  ;;  %v571_v15 = vpop.xlane.xlu1 %570 }
 0x386   :  { %v722_v17 = vrot.slane %v571_v15, %v1727_v22  ;;  %v644_v15 = vld [vmem:[#allocation7 + $0x8] sm:$0xff] }
 0x387   :  { %v640_v63 = vpop.xlane.xlu0 %639 }
 0x388   :  { %v727_v8 = vsel %vm690_vm3, %v726_v16, %v722_v17  ;;  %v825_v4 = vrot.slane %v640_v63, %v1729_v24  ;;  %v645_v24 = vld [vmem:[%s1977_s7] sm:$0xff] }
 0x389   :  { %v613_v18 = vpop.xlane.xlu1 %612  ;;  %1013 = vperm.xlu1 %1480, %v645_v24   ;;  %v1105_v16 = vld [vmem:[%s1978_s8] sm:$0xff] }
 0x38a   :  { %v785_v20 = vrot.slane %v613_v18, %v1727_v22 }
 0x38c   :  { %v790_v21 = vsel %vm690_vm3, %v789_v52, %v785_v20 }
 0x38d   :  { %v843_v23 = vsel %vm831_vm6, %v790_v21, %v842_v60  ;;  %v625_v25 = vpop.xlane.xlu1 %624 }
 0x38e   :  { %v844_v26 = vsel %vm833_vm7, %v799_v55, %v843_v23  ;;  %v803_v27 = vrot.slane %v625_v25, %v1727_v22 }
 0x38f   :  { %v1019_v17 = vpop.permute.xlu0 %1018 }
 0x390   :  { %v808_v28 = vsel %vm690_vm3, %v807_v45, %v803_v27  ;;  %v1106_v45 = vld [vmem:[%s1978_s8 + $0x8] sm:$0xff]  ;;  %s1585_s8 = smov [#allocation8]  }
 0x391   :  { %v845_v31 = vsel %vm835_vm8, %v808_v28, %v844_v26  ;;  %v631_v32 = vpop.xlane.xlu1 %630  ;;  %s1290_s1 = sshll.u32 %s1585_s8, 4  ;;  %s1291_s1 = int_to_ptr.vmem [resolvable:$true] %s1290_s1 }
 0x392   :  { %v812_v34 = vrot.slane %v631_v32, %v1727_v22  ;;  %s1547_s5 = scalar_lea.vmem %s1291_s1, 64  ;;  %p1552_p11 = scmp.lt.s32.totalorder %s1291_s1, %s1291_s1 }
 0x393   :  { %p1548_p10 = scmp.ne.s32.totalorder %s1291_s1, %s1547_s5  ;;  %p1553_p12 = scmp.lt.s32.totalorder %s1547_s5, %s1547_s5 }
 0x394   :  { %v817_v35 = vsel %vm690_vm3, %v816_v33, %v812_v34 }
 0x395   :  { %v846_v36 = vsel %vm837_vm9, %v817_v35, %v845_v31  ;;  %v565_v37 = vpop.xlane.xlu1 %564  ;;  %p1554_p13 = por %p1553_p12, %p1552_p11 }
 0x396   :  { %v713_v40 = vrot.slane %v565_v37, %v1727_v22 }
 0x397   :  { %p1555_p0 = pnand %p1554_p13, %p1548_p10 }
 0x398   :  { %v718_v42 = vsel %vm690_vm3, %v717_v38, %v713_v40 }
 0x399   :  { %v832_v43 = vsel %vm831_vm6, %v718_v42, %v830_v14  ;;  %v577_v44 = vpop.xlane.xlu1 %576 }
 0x39a   :  { %v834_v48 = vsel %vm833_vm7, %v727_v8, %v832_v43  ;;  %v731_v49 = vrot.slane %v577_v44, %v1727_v22 }
 0x39c   :  { %v736_v50 = vsel %vm690_vm3, %v735_v47, %v731_v49 }
 0x39d   :  { %v836_v53 = vsel %vm835_vm8, %v736_v50, %v834_v48  ;;  %v583_v56 = vpop.xlane.xlu1 %582 }
 0x39e   :  { %v740_v58 = vrot.slane %v583_v56, %v1727_v22 }
 0x3a0   :  { %v745_v59 = vsel %vm690_vm3, %v744_v57, %v740_v58 }
 0x3a1   :  { %v589_v54 = vpop.xlane.xlu1 %588  ;;  %v838_v60 = vsel %vm837_vm9, %v745_v59, %v836_v53 }
 0x3a2   :  { %v749_v62 = vrot.slane %v589_v54, %v1727_v22 }
 0x3a4   :  { %v754_v55 = vsel %vm690_vm3, %v753_v61, %v749_v62 }
 0x3a5   :  { %v637_v46 = vpop.xlane.xlu1 %636  ;;  %v840_v2 = vsel %vm839_vm10, %v754_v55, %v838_v60 }
 0x3a6   :  { %v821_v5 = vrot.slane %v637_v46, %v1727_v22  ;;  %1386 = vmatprep.mubr.msk.f32.mxu1 %vm848_vm11, %v840_v2  ;;  %v643_v22 = vld [vmem:[#allocation7] sm:$0xff] }
 0x3a7   :  { %1408 = vmatprep.mubr.msk.f32.mxu0 %vm1021_vm12, %v643_v22 }
 0x3a8   :  { %v826_v3 = vsel %vm690_vm3, %v825_v4, %v821_v5 }
 0x3a9   :  { %v847_v39 = vsel %vm839_vm10, %v826_v3, %v846_v36  ;;  %v1202_v36 = vld [vmem:[%s1980_s10] sm:$0xf] }
 0x3aa   :  { %1387 = vmatmul.mubr.msk.f32.vlgmr.msra.gmra.mrb[2].mxu1 %vm848_vm11, %v847_v39  ;;  %v1449_v6 = vpack.c.bf16 %v847_v39, %v840_v2 }
 0x3ab   :  { %1448 = vmatpush3.bf16.msra.mxu1 %v1864_v30  ;;  %v1107_v30 = vld [vmem:[%s1979_s9] sm:$0xff] }
 0x3ac   :  { %1450 = vmatprep.subr.bf16.mxu0 %v1449_v6  ;;  %1111 = vperm.xlu1 %1480, %v1107_v30  }
 0x3ad   :  { %1452 = vmatpush3.bf16.msra.mxu0 %v1449_v6 }
 0x3b0   :  { %1116 = vperm.xlu1 %1480, %v1108_v11  }
 0x408   :  { %v1014_v18 = vpop.permute.xlu1 %1013 }
 0x42b   :  { %v1112_v26 = vpop.permute.xlu1 %1111 }
 0x42f   :  { %v1117_v27 = vpop.permute.xlu1 %1116 }
 0x47d   :  { %v1388_v7 = vpop.f32.mrb[2].mxu1 }
 0x47e   :  { %v919_v9 = vpop.f32.mrb[3].mxu1 }
 0x47f   :  { %v1453_v10 = vpack.c.bf16 %v1388_v7, %v919_v9  ;;  %1393 = vmatprep.mubr.msk.f32.mxu1 %vm848_vm11, %v919_v9 }
 0x480   :  { %1394 = vmatmul.mubr.msk.f32.vlgmr.msra.gmra.mrb[4].mxu1 %vm848_vm11, %v1388_v7 }
 0x481   :  { %1454 = vmatprep.subr.bf16.mxu0 %v1453_v10  ;;  %1415 = vmatprep.mubr.msk.f32.mxu1 %vm848_vm11, %v1105_v16 }
 0x482   :  { %1456 = vmatpush3.bf16.msra.mxu0 %v1453_v10 }
 0x553   :  { %v1395_v12 = vpop.f32.mrb[4].mxu1 }
 0x554   :  { %v1000_v13 = vpop.f32.mrb[5].mxu1 }
 0x555   :  { %v1457_v14 = vpack.c.bf16 %v1395_v12, %v1000_v13 }
 0x557   :  { %1458 = vmatprep.subr.bf16.mxu0 %v1457_v14 }
 0x558   :  { %1460 = vmatpush3.bf16.msra.mxu0 %v1457_v14 }
 0x55b   :  { %1409 = vmatmul.mubr.msk.f32.vlgmr.msra.gmra.mrb[4].mxu0 %vm1021_vm12, %v644_v15 }
 0x62e   :  { %v1410_v8 = vpop.f32.mrb[4].mxu0 }
 0x62f   :  { %v1100_v52 = vadd.f32 %v1410_v8, %v1019_v17  ;;  %v1094_v20 = vpop.f32.mrb[5].mxu0 }
 0x630   :  { %v1095_v19 = vadd.f32 %v1094_v20, %v1014_v18 }
 0x631   :  { %v1104_v21 = vmax.f32 %v1100_v52, 0.0 }
 0x632   :  { %v1103_v23 = vmax.f32 %v1095_v19, 0.0 }
 0x634   :  { %v1461_v25 = vpack.c.bf16 %v1104_v21, %v1103_v23 }
 0x636   :  { %1462 = vmatprep.subr.bf16.mxu1 %v1461_v25 }
 0x637   :  { %1464 = vmatpush3.bf16.msra.mxu1 %v1461_v25 }
 0x638   :  { %1465 = vmatprep.subr.bf16.mxu1 %v1580_v0  ;;  %v1207_v0 = vpop.permute.xlu0 %1206 }
 0x63a   :  { %1416 = vmatmul.mubr.msk.f32.vlgmr.msra.gmra.mrb[6].mxu1 %vm848_vm11, %v1106_v45 }
 0x63b   :  { %1422 = vmatprep.mubr.msk.f32.mxu1 %vm1581_vm0, %v1582_v1 }
 0x70d   :  { %v1417_v28 = vpop.f32.mrb[6].mxu1 }
 0x70e   :  { %v1197_v29 = vadd.f32 %v1417_v28, %v1117_v27  ;;  %v1191_v31 = vpop.f32.mrb[7].mxu1 }
 0x70f   :  { %v1192_v32 = vadd.f32 %v1191_v31, %v1112_v26 }
 0x710   :  { %v1201_v33 = vmax.f32 %v1197_v29, 0.0 }
 0x711   :  { %v1200_v34 = vmax.f32 %v1192_v32, 0.0 }
 0x713   :  { %v1466_v35 = vpack.c.bf16 %v1201_v33, %v1200_v34 }
 0x715   :  { %1467 = vmatpush3.bf16.msra.mxu1 %v1466_v35 }
 0x718   :  { %1423 = vmatmul.mubr.msk.f32.vlgmr.msra.gmra.mrb[8].mxu1 %vm848_vm11, %v1202_v36 }
 0x7eb   :  { %v1278_v1 = vpop.f32.mrb[8].mxu1 }
 0x7ec   :  { %v1279_v37 = vadd.f32 %v1278_v1, %v1207_v0  ;;  %v1424_v38 = vpop.f32.mrb[9].mxu1 }
 0x7ee   :  { %1283 = vst.msk [vmem:[#allocation8] sm:$0xf] %vm1282_vm13, %v1279_v37 }
 0x7ef   :  { %1558 = shalt.err (!%p1555_p0)
}
 0x7f0   :  { %s1559_s29 = scalar_lea.hbm %s1982_s12, 64 }
 0x7f1   :  { %p1560_p1 = scmp.ne.s32.totalorder %s1982_s12, %s1559_s29  ;;  %p1563_p2 = scmp.lt.u32.totalorder %s1559_s29, %s1982_s12 }
 0x7f3   :  { %p1565_p3 = pnand %p1563_p2, %p1560_p1 }
 0x7f5   :  { %1568 = shalt.err (!%p1565_p3)
}
 0x7f6   :  { %1293 = dma.vmem_to_hbm [thread:$0]  %s1291_s1, 64, %s1982_s12, [#allocation4]  }
 0x7f7   :  { %1573 = dma.done.wait [#allocation4], 64  }
 0x7f8   :  { %1574 = vsyncadd [#allocation4], 4294967232 }
 0x7f9   :  { %1297 = vsyncpa [#allocation3], 1 }
 0x7fa   :  { %1298 = vsyncpa [#allocation6], 1 }
 0x7fb   :  { %1299 = vsyncpa [#allocation4], 1 }

</bundles_post_ra>
